<compile_context>
chip_gen: v6e
topology: v6e:2x2x1
jax: 0.10.0
libtpu: 0.0.40
codegen_flags: <defaults>
</compile_context>

<pallas_src>
import functools
import math

import jax
import jax.numpy as jnp
from jax.experimental import pallas as pl
from jax.experimental.pallas import tpu as pltpu


# -----------------------------------------------------------------------------
# Chip-dependent defaults (MXU rows, scoped-VMEM request).
# -----------------------------------------------------------------------------
@functools.lru_cache(maxsize=1)
def _tpu_defaults():
    kind = ""
    try:
        kind = jax.devices()[0].device_kind.lower()
    except Exception:
        pass
    vmem_phys = 128 << 20
    try:
        vmem_phys = int(pltpu.get_tpu_info().vmem_capacity_bytes)
    except Exception:
        pass
    is_v5e = ("v5e" in kind) or ("v5 lite" in kind) or ("v5lite" in kind)
    mxu_rows = 128 if is_v5e else 256          # v6e / v7x: 2x256^2 MXU
    # Explicit scoped-VMEM request: half of physical, capped at 64 MiB
    # (v5e/v6e -> 64 MiB, v7x (64 MiB physical) -> 32 MiB).
    vmem_limit = int(min(vmem_phys // 2, 64 << 20))
    return mxu_rows, vmem_limit


def _const_spec(block_shape, index_map):
    """Spec for a block whose index_map is constant across the grid: it is
    never re-fetched, so single-buffer it (halves its VMEM; matters most on
    v7x's 64 MiB).  Falls back cleanly if pipeline_mode is unavailable."""
    try:
        return pl.BlockSpec(block_shape, index_map, pipeline_mode=pl.Buffered(1))
    except TypeError:
        return pl.BlockSpec(block_shape, index_map)


def _pick_batch_tile(B, target):
    """Largest batch tile <= target that divides B and keeps the sublane rule
    (tile % 8 == 0) or covers the whole batch."""
    if B <= target:
        return B
    tb = (target // 8) * 8
    while tb >= 8:
        if B % tb == 0:
            return tb
        tb -= 8
    return B


# -----------------------------------------------------------------------------
# Kernel A: classifier.
#   pooled = mean_{H*W}(image); img_mlc = pooled @ Wm + bm;
#   img_emb = pooled @ We + be  (flat [num_topics*embed_dim], lane-dense, bf16)
# -----------------------------------------------------------------------------
def _classifier_kernel(img_ref, w_emb_ref, b_emb_ref, w_mlc_ref, b_mlc_ref,
                       mlc_ref, emb_ref, *, inv_hw):
    # img_ref: (TB, C, H*W) f32 — spatial axis flattened so the pooling
    # reduction is over a lane-dense last axis.
    pooled = jnp.sum(img_ref[...], axis=-1) * inv_hw                 # (TB, C) f32
    pooled_bf = pooled.astype(jnp.bfloat16)                          # MXU operand
    mlc_ref[...] = (jnp.dot(pooled_bf, w_mlc_ref[...],
                            preferred_element_type=jnp.float32)
                    + b_mlc_ref[...])                                # (TB, NT) f32
    emb_ref[...] = (jnp.dot(pooled_bf, w_emb_ref[...],
                            preferred_element_type=jnp.float32)
                    + b_emb_ref[...]).astype(jnp.bfloat16)           # (TB, NT*D) bf16


def classifier_forward(image, w_emb, b_emb, w_mlc, b_mlc, *, batch_tile=None):
    B, C, H, W = image.shape
    HW = H * W
    NT = w_mlc.shape[1]
    NTD = w_emb.shape[1]
    img = image.reshape(B, C, HW)              # free row-major view

    mxu_rows, vmem_limit = _tpu_defaults()
    if batch_tile is None:
        batch_tile = mxu_rows                  # 128 on v5e, 256 on v6e/v7x
    budget = int(vmem_limit * 0.75)            # slack for compiler scratch
    # Per-sample bytes of every batch-tiled, double-buffered block (image in,
    # mlc out f32, emb out bf16) + single-buffered constant weights/biases.
    per_row = 2 * (C * HW * 4 + NTD * 2 + NT * 4)
    fixed = C * NTD * 2 + C * NT * 2 + NTD * 4 + NT * 4
    tb = _pick_batch_tile(
        B, max(1, min(batch_tile, (budget - fixed) // max(per_row, 1))))
    grid = (B // tb,)

    kernel = functools.partial(_classifier_kernel, inv_hw=1.0 / float(HW))
    mlc, emb = pl.pallas_call(
        kernel,
        out_shape=(jax.ShapeDtypeStruct((B, NT), jnp.float32),
                   jax.ShapeDtypeStruct((B, NTD), jnp.bfloat16)),
        grid_spec=pltpu.PrefetchScalarGridSpec(
            num_scalar_prefetch=0,
            grid=grid,
            in_specs=[
                pl.BlockSpec((tb, C, HW), lambda b: (b, 0, 0)),
                _const_spec((C, NTD), lambda b: (0, 0)),   # constant weight
                _const_spec((1, NTD), lambda b: (0, 0)),   # constant bias
                _const_spec((C, NT), lambda b: (0, 0)),    # constant weight
                _const_spec((1, NT), lambda b: (0, 0)),    # constant bias
            ],
            out_specs=[
                pl.BlockSpec((tb, NT), lambda b: (b, 0)),
                pl.BlockSpec((tb, NTD), lambda b: (b, 0)),  # lane-dense slab
            ],
        ),
        compiler_params=pltpu.CompilerParams(
            dimension_semantics=("parallel",),
            vmem_limit_bytes=vmem_limit),
    )(img, w_emb, b_emb, w_mlc, b_mlc)
    return mlc, emb


# -----------------------------------------------------------------------------
# Kernel B: generator (with fused ClsGen src_emb = img_emb + label_embedding).
#   grid = (batch_tiles, vocab_tiles).  At v == 0: batched cross-attention +
#   pad masking -> cap_emb (stashed flattened in VMEM scratch + written to the
#   resident cap_emb block).  Every v: one (TB*T, D) @ (D, TV) vocab matmul.
# -----------------------------------------------------------------------------
def _generator_kernel(img_emb_ref, lbl_tab_ref, tok_ref, cap_ref, w_vocab_ref,
                      cap_gen_ref, cap_emb_ref, cap_emb_vmem, *, pad_id, scale):
    @pl.when(pl.program_id(1) == 0)
    def _():
        src = img_emb_ref[...].astype(jnp.float32) + lbl_tab_ref[...]   # (TB, NT, D)
        tok = tok_ref[...]                                              # (TB, T, D)
        src_bf = src.astype(jnp.bfloat16)
        scores = jax.lax.dot_general(                                   # (TB, T, NT)
            tok.astype(jnp.bfloat16), src_bf,
            dimension_numbers=(((2,), (2,)), ((0,), (0,))),
            preferred_element_type=jnp.float32) * scale
        scores = scores - jnp.max(scores, axis=-1, keepdims=True)
        p = jnp.exp(scores)
        attn = p * pl.reciprocal(jnp.sum(p, axis=-1, keepdims=True), approx=True)
        ctx = jax.lax.dot_general(                                      # (TB, T, D)
            attn.astype(jnp.bfloat16), src_bf,
            dimension_numbers=(((2,), (1,)), ((0,), (0,))),
            preferred_element_type=jnp.float32)
        # pad mask built in-kernel from the compact int32 caption rows
        keep = (cap_ref[...] != pad_id).astype(jnp.float32)[:, :, None]  # (TB, T, 1)
        cap_emb = (tok + ctx) * keep
        tb, t, d = cap_emb.shape
        cap_emb_vmem[...] = cap_emb.reshape(tb * t, d)   # MXU-ready 2-D stash
        cap_emb_ref[...] = cap_emb

    # vocab projection for this V tile: single 2-D MXU matmul, M = TB*T,
    # lane-dense store straight into the flattened cap_gen slab.
    cap_gen_ref[...] = jnp.dot(cap_emb_vmem[...].astype(jnp.bfloat16),
                               w_vocab_ref[...],
                               preferred_element_type=jnp.float32)


def generator_forward(img_emb, lbl_table, tok_emb, caption, w_vocab, *, pad_id):
    B, NT, D = img_emb.shape
    T = tok_emb.shape[1]
    V = w_vocab.shape[1]

    mxu_rows, vmem_limit = _tpu_defaults()
    budget = int(vmem_limit * 0.75)

    # Batch tile: fill the MXU M dimension (TB*T >= mxu_rows when possible)
    # and amortize each streamed w_vocab tile over TB samples.
    tbg = _pick_batch_tile(B, pl.cdiv(mxu_rows, T))
    nb = B // tbg

    # Vocab tile derived against the VMEM budget; the double-buffered weight
    # and logits blocks are the moving parts.  Cap at 2048 lanes.
    fixed = (2 * tbg * NT * D * img_emb.dtype.itemsize    # img_emb blocks
             + 2 * tbg * T * D * 4                        # tok_emb blocks
             + 2 * tbg * T * 4                            # caption blocks
             + NT * D * 4                                 # label table (1-buffered)
             + 2 * tbg * T * D * 4                        # cap_emb output blocks
             + tbg * T * D * 4)                           # cap_emb scratch
    per_col = 2 * (D * w_vocab.dtype.itemsize + tbg * T * 4)
    tv_cap = ((max(budget - fixed, per_col * 128) // per_col) // 128) * 128
    tv_cap = int(max(128, min(tv_cap, 2048)))
    if V <= tv_cap:
        tv, v_pad = V, V              # single full-width tile, no padding
    else:
        tv = tv_cap
        v_pad = ((V + tv - 1) // tv) * tv
        w_vocab = jnp.pad(w_vocab, ((0, 0), (0, v_pad - V)))  # lane-dense tail tile
    nv = v_pad // tv

    kernel = functools.partial(_generator_kernel, pad_id=pad_id,
                               scale=1.0 / math.sqrt(D))
    cap_gen_flat, cap_emb = pl.pallas_call(
        kernel,
        out_shape=(jax.ShapeDtypeStruct((B * T, v_pad), jnp.float32),
                   jax.ShapeDtypeStruct((B, T, D), jnp.float32)),
        grid_spec=pltpu.PrefetchScalarGridSpec(
            num_scalar_prefetch=0,
            grid=(nb, nv),
            in_specs=[
                pl.BlockSpec((tbg, NT, D), lambda b, v: (b, 0, 0)),   # img_emb (bf16)
                _const_spec((NT, D), lambda b, v: (0, 0)),            # label table
                pl.BlockSpec((tbg, T, D), lambda b, v: (b, 0, 0)),    # tok_emb
                pl.BlockSpec((tbg, T), lambda b, v: (b, 0)),          # caption ids
                pl.BlockSpec((D, tv), lambda b, v: (0, v)),           # vocab W tile
            ],
            out_specs=[
                pl.BlockSpec((tbg * T, tv), lambda b, v: (b, v)),     # cap_gen (flat)
                pl.BlockSpec((tbg, T, D), lambda b, v: (b, 0, 0)),    # cap_emb
            ],
            scratch_shapes=[pltpu.VMEM((tbg * T, D), jnp.float32)],   # cap_emb stash
        ),
        compiler_params=pltpu.CompilerParams(
            dimension_semantics=("parallel", "arbitrary"),
            vmem_limit_bytes=vmem_limit),
    )(img_emb, lbl_table, tok_emb, caption, w_vocab)

    cap_gen = cap_gen_flat.reshape(B, T, v_pad)
    if v_pad != V:
        cap_gen = cap_gen[..., :V]
    return cap_gen, cap_emb


# -----------------------------------------------------------------------------
# ClsGen wrapper (mirrors the PyTorch forward, teacher-forced caption path)
# -----------------------------------------------------------------------------
class ClsGenPallas:
    def __init__(self, key, *, num_topics, embed_dim, in_channels, vocab_size):
        self.num_topics = num_topics
        self.embed_dim = embed_dim
        self.vocab_size = vocab_size
        ks = jax.random.split(key, 5)
        scale = 0.02
        # MXU-facing weights stored in bf16 (matmuls accumulate in f32);
        # embedding tables / biases stay f32.
        self.w_emb = (scale * jax.random.normal(
            ks[0], (in_channels, num_topics * embed_dim), jnp.float32)
        ).astype(jnp.bfloat16)
        self.b_emb = jnp.zeros((1, num_topics * embed_dim), jnp.float32)
        self.w_mlc = (scale * jax.random.normal(
            ks[1], (in_channels, num_topics), jnp.float32)).astype(jnp.bfloat16)
        self.b_mlc = jnp.zeros((1, num_topics), jnp.float32)
        # ClsGen label_embedding: nn.Embedding(num_topics, embed_dim)
        self.label_embedding = scale * jax.random.normal(
            ks[2], (num_topics, embed_dim), jnp.float32)
        # synthetic generator params
        self.token_embedding = scale * jax.random.normal(
            ks[3], (vocab_size, embed_dim), jnp.float32)
        self.w_vocab = (scale * jax.random.normal(
            ks[4], (embed_dim, vocab_size), jnp.float32)).astype(jnp.bfloat16)

    def __call__(self, image, history=None, caption=None, label=None,
                 threshold=0.15, bos_id=1, eos_id=2, pad_id=3,
                 max_len=250, get_emb=False):
        # label = label.long() if provided (synthetic classifier ignores it)
        label = label.astype(jnp.int32) if label is not None else None

        # classifier -> (img_mlc, img_emb_flat); flat slab is lane-dense bf16
        img_mlc, img_emb_flat = classifier_forward(
            image, self.w_emb, self.b_emb, self.w_mlc, self.b_mlc)
        B = image.shape[0]
        img_emb = img_emb_flat.reshape(B, self.num_topics, self.embed_dim)

        # lbl_idx = arange(num_topics) per batch element -> embedding(lbl_idx)
        # is the full table; the `img_emb + lbl_emb` add is fused in-kernel.
        if caption is not None:
            caption = caption.astype(jnp.int32)
            # data-dependent token gather stays in XLA glue
            tok_emb = jnp.take(self.token_embedding, caption, axis=0)
            cap_gen, cap_emb = generator_forward(
                img_emb, self.label_embedding, tok_emb, caption, self.w_vocab,
                pad_id=pad_id)
            if get_emb:
                return cap_gen, img_mlc, cap_emb
            return cap_gen, img_mlc
        # TODO(synk): autoregressive greedy-decode path (caption=None, max_len
        # loop with bos/eos) not implemented; only the teacher-forced path is.
        raise NotImplementedError("caption=None decode path not implemented")


if __name__ == "__main__":
    key = jax.random.PRNGKey(0)
    k_img, k_cap, k_model = jax.random.split(key, 3)

    # small shapes consistent with the module
    B, C, H, W = 2, 4, 16, 16          # image NCHW
    num_topics, embed_dim = 8, 32
    T, vocab_size = 8, 32
    pad_id = 3

    image = jax.random.normal(k_img, (B, C, H, W), jnp.float32)
    caption = jax.random.randint(k_cap, (B, T), 0, vocab_size, jnp.int32)
    caption = caption.at[:, -2:].set(pad_id)   # some padded target positions

    model = ClsGenPallas(k_model, num_topics=num_topics, embed_dim=embed_dim,
                         in_channels=C, vocab_size=vocab_size)

    cap_gen, img_mlc, cap_emb = model(image, caption=caption, pad_id=pad_id,
                                      get_emb=True)
    jax.block_until_ready((cap_gen, img_mlc, cap_emb))

    assert cap_gen.shape == (B, T, vocab_size)
    assert img_mlc.shape == (B, num_topics)
    assert cap_emb.shape == (B, T, embed_dim)
    print("KERNEL_OK")
</pallas_src>

<mosaic_0001>
module attributes {stable_mosaic.version = 11 : i64} {
  func.func @_classifier_kernel(%arg0: i32, %arg1: memref<2x4x256xf32, #tpu.memory_space<vmem>>, %arg2: memref<4x256xbf16, #tpu.memory_space<vmem>>, %arg3: memref<1x256xf32, #tpu.memory_space<vmem>>, %arg4: memref<4x8xbf16, #tpu.memory_space<vmem>>, %arg5: memref<1x8xf32, #tpu.memory_space<vmem>>, %arg6: memref<2x8xf32, #tpu.memory_space<vmem>>, %arg7: memref<2x256xbf16, #tpu.memory_space<vmem>>) attributes {dimension_semantics = [#tpu.dimension_semantics<parallel>], iteration_bounds = array<i64: 1>, scalar_prefetch = 0 : i64, scratch_operands = 0 : i64, tpu.core_type = #tpu.core_type<tc>, window_params = [{transform_indices = @transform_0, window_bounds = array<i64: 2, 4, 256>}, {pipeline_mode = #tpu.pipeline_mode<synchronous>, transform_indices = @transform_1, window_bounds = array<i64: 4, 256>}, {pipeline_mode = #tpu.pipeline_mode<synchronous>, transform_indices = @transform_2, window_bounds = array<i64: 1, 256>}, {pipeline_mode = #tpu.pipeline_mode<synchronous>, transform_indices = @transform_3, window_bounds = array<i64: 4, 8>}, {pipeline_mode = #tpu.pipeline_mode<synchronous>, transform_indices = @transform_4, window_bounds = array<i64: 1, 8>}, {transform_indices = @transform_5, window_bounds = array<i64: 2, 8>}, {transform_indices = @transform_6, window_bounds = array<i64: 2, 256>}]} {
    %c0 = arith.constant 0 : index
    %c0_0 = arith.constant 0 : index
    %c0_1 = arith.constant 0 : index
    %0 = vector.load %arg1[%c0, %c0_0, %c0_1] : memref<2x4x256xf32, #tpu.memory_space<vmem>>, vector<2x4x256xf32>
    %cst = arith.constant dense<0.000000e+00> : vector<2x4xf32>
    %1 = vector.multi_reduction <add>, %0, %cst [2] : vector<2x4x256xf32> to vector<2x4xf32>
    %cst_2 = arith.constant 3.906250e-03 : f32
    %2 = vector.broadcast %cst_2 : f32 to vector<2x4xf32>
    %3 = arith.mulf %1, %2 : vector<2x4xf32>
    %4 = arith.truncf %3 : vector<2x4xf32> to vector<2x4xbf16>
    %c0_3 = arith.constant 0 : index
    %c0_4 = arith.constant 0 : index
    %5 = vector.load %arg4[%c0_3, %c0_4] : memref<4x8xbf16, #tpu.memory_space<vmem>>, vector<4x8xbf16>
    %cst_5 = arith.constant dense<0.000000e+00> : vector<2x8xf32>
    %6 = tpu.matmul %4, %5, %cst_5 {dimension_numbers = #tpu.dot_dimension_numbers<[1], [0], [0], [1], [0, 0, 1, 1], [], []>} : vector<2x4xbf16>, vector<4x8xbf16>, vector<2x8xf32> -> vector<2x8xf32>
    %c0_6 = arith.constant 0 : index
    %c0_7 = arith.constant 0 : index
    %7 = vector.load %arg5[%c0_6, %c0_7] : memref<1x8xf32, #tpu.memory_space<vmem>>, vector<1x8xf32>
    %8 = vector.broadcast %7 : vector<1x8xf32> to vector<2x8xf32>
    %9 = arith.addf %6, %8 : vector<2x8xf32>
    %c0_8 = arith.constant 0 : index
    %c0_9 = arith.constant 0 : index
    %10 = vector.load %arg6[%c0_8, %c0_9] : memref<2x8xf32, #tpu.memory_space<vmem>>, vector<2x8xf32>
    tpu.vector_store %arg6[%c0_8, %c0_9], %9 {strides = array<i32>} : memref<2x8xf32, #tpu.memory_space<vmem>>, vector<2x8xf32>,
    %c0_10 = arith.constant 0 : index
    %c0_11 = arith.constant 0 : index
    %11 = vector.load %arg2[%c0_10, %c0_11] : memref<4x256xbf16, #tpu.memory_space<vmem>>, vector<4x256xbf16>
    %cst_12 = arith.constant dense<0.000000e+00> : vector<2x256xf32>
    %12 = tpu.matmul %4, %11, %cst_12 {dimension_numbers = #tpu.dot_dimension_numbers<[1], [0], [0], [1], [0, 0, 1, 1], [], []>} : vector<2x4xbf16>, vector<4x256xbf16>, vector<2x256xf32> -> vector<2x256xf32>
    %c0_13 = arith.constant 0 : index
    %c0_14 = arith.constant 0 : index
    %13 = vector.load %arg3[%c0_13, %c0_14] : memref<1x256xf32, #tpu.memory_space<vmem>>, vector<1x256xf32>
    %14 = vector.broadcast %13 : vector<1x256xf32> to vector<2x256xf32>
    %15 = arith.addf %12, %14 : vector<2x256xf32>
    %16 = arith.truncf %15 : vector<2x256xf32> to vector<2x256xbf16>
    %c0_15 = arith.constant 0 : index
    %c0_16 = arith.constant 0 : index
    %17 = vector.load %arg7[%c0_15, %c0_16] : memref<2x256xbf16, #tpu.memory_space<vmem>>, vector<2x256xbf16>
    tpu.vector_store %arg7[%c0_15, %c0_16], %16 {strides = array<i32>} : memref<2x256xbf16, #tpu.memory_space<vmem>>, vector<2x256xbf16>,
    return
  }
  func.func @transform_0(%arg0: i32) -> (i32, i32, i32) {
    %c0_i32 = arith.constant 0 : i32
    %c0_i32_0 = arith.constant 0 : i32
    %c0_i32_1 = arith.constant 0 : i32
    return %arg0, %c0_i32, %c0_i32_0 : i32, i32, i32
  }
  func.func @transform_1(%arg0: i32) -> (i32, i32) {
    %c0_i32 = arith.constant 0 : i32
    %c0_i32_0 = arith.constant 0 : i32
    %c0_i32_1 = arith.constant 0 : i32
    return %c0_i32, %c0_i32_0 : i32, i32
  }
  func.func @transform_2(%arg0: i32) -> (i32, i32) {
    %c0_i32 = arith.constant 0 : i32
    %c0_i32_0 = arith.constant 0 : i32
    %c0_i32_1 = arith.constant 0 : i32
    return %c0_i32, %c0_i32_0 : i32, i32
  }
  func.func @transform_3(%arg0: i32) -> (i32, i32) {
    %c0_i32 = arith.constant 0 : i32
    %c0_i32_0 = arith.constant 0 : i32
    %c0_i32_1 = arith.constant 0 : i32
    return %c0_i32, %c0_i32_0 : i32, i32
  }
  func.func @transform_4(%arg0: i32) -> (i32, i32) {
    %c0_i32 = arith.constant 0 : i32
    %c0_i32_0 = arith.constant 0 : i32
    %c0_i32_1 = arith.constant 0 : i32
    return %c0_i32, %c0_i32_0 : i32, i32
  }
  func.func @transform_5(%arg0: i32) -> (i32, i32) {
    %c0_i32 = arith.constant 0 : i32
    %c0_i32_0 = arith.constant 0 : i32
    return %arg0, %c0_i32 : i32, i32
  }
  func.func @transform_6(%arg0: i32) -> (i32, i32) {
    %c0_i32 = arith.constant 0 : i32
    %c0_i32_0 = arith.constant 0 : i32
    return %arg0, %c0_i32 : i32, i32
  }
}

</mosaic_0001>

<bundles_post_ra>
// kernel: tpu_custom_call.1
= control target key start
LH: loop header
LB: loop body
LE: loop exit
PB: predicated region body
PF: predicated region fallthrough
CT: control target
= control target key end

     0   :  { %12 = vsyncpa [#allocation3], 0  ;;  %s450_s0 = inlined_call_operand.hbm [shape: f32[2,4,256], index: 0, kind: input, shape index: {}]   ;;  %s451_s1 = inlined_call_operand.hbm [shape: bf16[4,256], index: 1, kind: input, shape index: {}]   ;;  %s452_s2 = inlined_call_operand.vmem [shape: f32[1,256], index: 2, kind: input, shape index: {}]   ;;  %s453_s3 = inlined_call_operand.vmem [shape: bf16[4,8], index: 3, kind: input, shape index: {}]   ;;  %s454_s4 = inlined_call_operand.vmem [shape: f32[1,8], index: 4, kind: input, shape index: {}]   ;;  %s455_s5 = inlined_call_operand.hbm [shape: f32[2,8], index: 5, kind: output, shape index: {0}]   ;;  %s456_s6 = inlined_call_operand.hbm [shape: bf16[2,256], index: 6, kind: output, shape index: {1}]  }
   0x1   :  { %13 = vsyncpa [#allocation6], 0 }
   0x2   :  { %14 = vsyncpa [#allocation4], 0 }
   0x3   :  { %15 = vsyncpa [#allocation9], 0  ;;  %s384_s21 = smov [#allocation2]  }
   0x4   :  { %s21_s22 = sshll.u32 %s384_s21, 4  ;;  %s22_s22 = int_to_ptr.vmem [resolvable:$true] %s21_s22 }
   0x5   :  { %s304_s23 = scalar_lea.vmem %s22_s22, 256  ;;  %p309_p1 = scmp.lt.s32.totalorder %s22_s22, %s22_s22 }
   0x6   :  { %p305_p0 = scmp.ne.s32.totalorder %s22_s22, %s304_s23  ;;  %p310_p2 = scmp.lt.s32.totalorder %s304_s23, %s304_s23 }
   0x8   :  { %p311_p3 = por %p310_p2, %p309_p1 }
   0xa   :  { %p312_p4 = pnand %p311_p3, %p305_p0 }
   0xc   :  { %315 = shalt.err (!%p312_p4)
}
   0xd   :  { %s385_s24 = smov 128   ;;  %s386_s25 = smov 8  }
   0xe   :  { %27 = dma.hbm_to_vmem [thread:$0]  %s450_s0, 256, %s22_s22, [#allocation3], %s385_s24, %s385_s24, %s386_s25  }
   0xf   :  { %s387_s28 = smov [#allocation5]  }
  0x10   :  { %s34_s29 = sshll.u32 %s387_s28, 4  ;;  %s35_s29 = int_to_ptr.vmem [resolvable:$true] %s34_s29 }
  0x11   :  { %s324_s30 = scalar_lea.vmem %s35_s29, 64  ;;  %p329_p6 = scmp.lt.s32.totalorder %s35_s29, %s35_s29 }
  0x12   :  { %p325_p5 = scmp.ne.s32.totalorder %s35_s29, %s324_s30  ;;  %p330_p7 = scmp.lt.s32.totalorder %s324_s30, %s324_s30 }
  0x14   :  { %p331_p8 = por %p330_p7, %p329_p6 }
  0x16   :  { %p332_p9 = pnand %p331_p8, %p325_p5 }
  0x18   :  { %335 = shalt.err (!%p332_p9)
}
  0x19   :  { %37 = dma.hbm_to_vmem [thread:$0]  %s451_s1, 64, %s35_s29, [#allocation6]  }
  0x1a   :  { %376 = dma.done.wait [#allocation3], 256  }
  0x1b   :  { %377 = vsyncadd [#allocation3], 4294967040 }
  0x1c   :  { %378 = dma.done.wait [#allocation6], 64  }
  0x1d   :  { %379 = vsyncadd [#allocation6], 4294967232  ;;  %vm59_vm0 = vcmask 1043456   ;;  %v51_v0 = vld [vmem:[#allocation2] sm:$0xff]  ;;  %v52_v1 = vld [vmem:[#allocation2 + $0x8] sm:$0xff]  ;;  %vm103_vm1 = vcmask 1041408   ;;  %v86_v17 = vlaneseq }
  0x1e   :  { %v55_v2 = vcombine.high %v51_v0, %v51_v0  ;;  %v60_v3 = vsel %vm59_vm0, %v51_v0, 0.0  ;;  %v56_v4 = vcombine.high %v52_v1, %v52_v1  ;;  %v65_v6 = vsel %vm59_vm0, %v52_v1, 0.0  ;;  %v271_v10 = vld.sshfl [vmem:[#allocation5] sm:$0x33 pattern:$0x76325410] }
  0x1f   :  { %v170_v11 = vcombine.high %v271_v10, %v271_v10  ;;  %v74_v12 = vld [vmem:[%s453_s3] sm:$0x3]  ;;  %v388_v13 = vmov 0.0   ;;  %v172_v15 = vsel %vm103_vm1, %v271_v10, 0  ;;  %vm389_vm2 = vmmov 0   ;;  %s392_s12 = smov [#allocation7]  }
  0x20   :  { %v61_v5 = vsel %vm59_vm0, %v55_v2, 0.0  ;;  %v66_v7 = vsel %vm59_vm0, %v56_v4, 0.0  ;;  %278 = vmatprep.subr.bf16.mxu0 %v388_v13  ;;  %v105_v14 = vsel %vm103_vm1, %v74_v12, 0  ;;  %280 = vmatprep.mubr.msk.bf16.mxu0 %vm389_vm2, %v388_v13  ;;  %v390_v16 = vmov 0   ;;  %v150_v37 = vld [vmem:[%s452_s2] sm:$0x3] }
  0x21   :  { %v62_v8 = vadd.f32 %v61_v5, %v60_v3  ;;  %v67_v9 = vadd.f32 %v66_v7, %v65_v6  ;;  %272 = vmatprep.subr.msk.bf16.mxu1 %vm103_vm1, %v170_v11  ;;  %279 = vmatpush3.bf16.msra.mxu0 %v105_v14  ;;  %v87_v20 = vand.u32 127, %v86_v17  ;;  %v89_v21 = vshrl.u32 %v86_v17, 7  ;;  %v269_v38 = vld [vmem:[%s454_s4] ss:$0 sm:$0xff]  ;;  %s245_s13 = sshll.u32 %s392_s12, 4  ;;  %s393_s2 = smov [#allocation8]   ;;  %s246_s13 = int_to_ptr.vmem [resolvable:$true] %s245_s13 }
  0x22   :  { %192 = vmatpush1.bf16.msra.mxu1 %v172_v15  ;;  %209 = vmatprep.mubr.bf16.mxu1 %v390_v16  ;;  %vm96_vm3 = vcmask 1041409   ;;  %vm99_vm4 = vcmask 31744   ;;  %v391_v35 = vmov 1966171168   ;;  %vm147_vm5 = vcmask 58368   ;;  %s255_s14 = sshll.u32 %s393_s2, 4  ;;  %p341_p11 = scmp.lt.s32.totalorder %s246_s13, %s246_s13  ;;  %s256_s14 = int_to_ptr.vmem [resolvable:$true] %s255_s14 }
  0x23   :  { %63 = vadd.xlane.f32.xlu0 %v62_v8  ;;  %v90_v25 = vsub.s32 %v87_v20, %v89_v21  ;;  %v154_v33 = vsub.s32 0, %v89_v21  ;;  %v158_v34 = vsub.s32 1, %v89_v21  ;;  %v224_v36 = vunpack.c.l.s4 %v391_v35  ;;  %s336_s4 = scalar_lea.vmem %s246_s13, 32 }
  0x24   :  { %p337_p10 = scmp.ne.s32.totalorder %s246_s13, %s336_s4  ;;  %p342_p12 = scmp.lt.s32.totalorder %s336_s4, %s336_s4 }
  0x25   :  { %v155_v39 = vrot.slane %v150_v37, %v154_v33  ;;  %v159_v40 = vrot.slane %v150_v37, %v158_v34  ;;  %v225_v41 = vunpack.c.0.s8 %v224_v36 }
  0x26   :  { %p343_p13 = por %p342_p12, %p341_p11 }
  0x27   :  { %68 = vadd.xlane.f32.xlu0 %v67_v9  ;;  %v228_v49 = vsub.s32 %v225_v41, %v89_v21 }
  0x28   :  { %p344_p0 = pnand %p343_p13, %p337_p10 }
  0xac   :  { %v64_v18 = vpop.xlane.xlu0 %63 }
  0xad   :  { %v70_v19 = vmul.f32 0.00390625, %v64_v18 }
  0xaf   :  { %v72_v22 = vpack.c.bf16 %v70_v19, %v70_v19 }
  0xb0   :  { %v69_v23 = vpop.xlane.xlu0 %68 }
  0xb1   :  { %v71_v24 = vmul.f32 0.00390625, %v69_v23  ;;  %v84_v26 = vunpack.c.l.b16 %v72_v22 }
  0xb3   :  { %v73_v27 = vpack.c.bf16 %v71_v24, %v71_v24  ;;  %v91_v29 = vrot.slane %v84_v26, %v90_v25 }
  0xb5   :  { %v85_v28 = vunpack.c.l.b16 %v73_v27 }
  0xb7   :  { %v95_v30 = vrot.slane %v85_v28, %v90_v25 }
  0xb9   :  { %v97_v31 = vsel %vm96_vm3, %v95_v30, %v91_v29 }
  0xba   :  { %v98_v32 = vpack.c.b16 %v97_v31, %v97_v31 }
  0xbc   :  { %281 = vmatmul.mubr.msk.bf16.vlgmr.msra.gmra.mxu0 %vm99_vm4, %v98_v32  ;;  %273 = vmatmul.mubr.msk.bf16.vlgmr.msra.gmra.mxu1 %vm99_vm4, %v98_v32 }
 0x17c   :  { %v141_v42 = vpop.f32.mrf.mxu0  ;;  %v211_v43 = vpop.f32.mrf.mxu1 }
 0x17d   :  { %v142_v44 = vadd.f32 %v269_v38, %v141_v42  ;;  %v212_v47 = vadd.f32 %v211_v43, %v155_v39 }
 0x17e   :  { %v282_v45 = vpop.f32.mrf.mxu0  ;;  %v213_v46 = vpop.f32.mrf.mxu1 }
 0x17f   :  { %v214_v48 = vadd.f32 %v213_v46, %v159_v40  ;;  %148 = vst.msk [vmem:[#allocation7] sm:$0x3] %vm147_vm5, %v142_v44 }
 0x180   :  { %v144_v50 = vpop.f32.mrf.mxu0  ;;  %v215_v51 = vpop.f32.mrf.mxu1 }
 0x181   :  { %347 = shalt.err (!%p344_p0)
}
 0x182   :  { %248 = dma.vmem_to_hbm [thread:$0]  %s246_s13, 32, %s455_s5, [#allocation4]   ;;  %v274_v52 = vpack.c.bf16 %v214_v48, %v212_v47  ;;  %v283_v53 = vpop.f32.mrf.mxu0  ;;  %v216_v54 = vpop.f32.mrf.mxu1 }
 0x183   :  { %s356_s17 = scalar_lea.vmem %s256_s14, 32  ;;  %p361_p2 = scmp.lt.s32.totalorder %s256_s14, %s256_s14 }
 0x184   :  { %v229_v55 = vrot.slane %v274_v52, %v228_v49  ;;  %p357_p1 = scmp.ne.s32.totalorder %s256_s14, %s356_s17  ;;  %p362_p3 = scmp.lt.s32.totalorder %s356_s17, %s356_s17 }
 0x186   :  { %275 = vst.sshfl [vmem:[#allocation8] sm:$0x5 pattern:$0x73625140] %v229_v55  ;;  %p363_p4 = por %p362_p3, %p361_p2 }
 0x188   :  { %p364_p5 = pnand %p363_p4, %p357_p1 }
 0x18a   :  { %367 = shalt.err (!%p364_p5)
}
 0x18b   :  { %258 = dma.vmem_to_hbm [thread:$0]  %s256_s14, 32, %s456_s6, [#allocation9]  }
 0x18c   :  { %380 = dma.done.wait [#allocation4], 32  }
 0x18d   :  { %381 = vsyncadd [#allocation4], 4294967264 }
 0x18e   :  { %382 = dma.done.wait [#allocation9], 32  }
 0x18f   :  { %383 = vsyncadd [#allocation9], 4294967264 }
 0x190   :  { %265 = vsyncpa [#allocation3], 1 }
 0x191   :  { %266 = vsyncpa [#allocation6], 1 }
 0x192   :  { %267 = vsyncpa [#allocation4], 1 }
 0x193   :  { %268 = vsyncpa [#allocation9], 1 }

</bundles_post_ra>
